<compile_context>
chip_gen: v6e
topology: v6e:2x2x1
jax: 0.10.0
libtpu: 0.0.40
codegen_flags: <defaults>
</compile_context>

<pallas_src>
import jax
import jax.numpy as jnp
from jax.experimental import pallas as pl
from jax.experimental.pallas import tpu as pltpu


# --------------------------------------------------------------------------
# Kernel
# --------------------------------------------------------------------------
def titanic_mlp_kernel(x_ref, w1_ref, w2_ref, b2_ref, w3_ref, b3_ref, o_ref):
    # Feature-major tiles: batch lives on the lane axis, so all outputs below
    # are lane-dense (TB is a multiple of 128).
    xt = x_ref[...]                                                     # (8, TB)

    # layer1 (+ folded BN1 + bias-as-weight-column) + relu
    h1 = jnp.dot(w1_ref[...], xt, preferred_element_type=jnp.float32)   # (128, TB)
    h1 = jnp.maximum(h1, 0.0)

    # Dropout(p=0.3): identity in eval mode.
    # TODO(synk): training-mode dropout (pltpu.prng_random_bits mask) not emitted.

    # layer2 (+ folded BN2) + relu
    h1 = h1.astype(w2_ref.dtype)
    h2 = jnp.dot(w2_ref[...], h1, preferred_element_type=jnp.float32)   # (64, TB)
    h2 = jnp.maximum(h2 + b2_ref[...], 0.0)

    # layer3 (logits, rows padded 2 -> 8), feature-major: (8, TB)
    h2 = h2.astype(w3_ref.dtype)
    o_ref[...] = (jnp.dot(w3_ref[...], h2, preferred_element_type=jnp.float32)
                  + b3_ref[...])


# --------------------------------------------------------------------------
# Wrapper
# --------------------------------------------------------------------------
def _round_up(n, m):
    return ((n + m - 1) // m) * m


def titanic_nn_forward(x, folded_params, *, tile_b=512,
                       compute_dtype=jnp.float32):
    """x: (B, 7) f32.  Returns logits (B, 2) f32.

    tile_b: batch tile (lane axis). Per-step VMEM footprint at tile_b=512 is
    well under 1 MiB, so it fits every generation's scoped default; raise
    tile_b (and vmem_limit_bytes) for very large inference batches — size it
    for 64 MiB total VMEM on v7x, 128 MiB on v5e/v6e.
    compute_dtype: set to jnp.bfloat16 on v6e/v7x for the full-rate MXU path
    (accumulation stays f32 via preferred_element_type).
    """
    w1_aug, w2, b2, w3_pad, b3_pad = folded_params
    B = x.shape[0]

    # Batch maps to lanes -> pad to a multiple of 128, then tile. Small
    # batches collapse to a single grid step (no pointless tiny-step grid).
    Bp = _round_up(max(B, 1), 128)
    tb = min(tile_b, Bp)
    Bp = _round_up(Bp, tb)
    num_tiles = Bp // tb

    # Feature-major input with a constant-1 row so layer-1's bias rides in
    # the MXU contraction (K: 7 -> 8).
    xt = jnp.zeros((8, Bp), compute_dtype)
    xt = xt.at[:7, :B].set(x.T.astype(compute_dtype))
    xt = xt.at[7, :B].set(1.0)

    args = (xt,
            w1_aug.astype(compute_dtype),
            w2.astype(compute_dtype), b2.astype(compute_dtype),
            w3_pad.astype(compute_dtype), b3_pad.astype(compute_dtype))

    out_t = pl.pallas_call(
        titanic_mlp_kernel,
        out_shape=jax.ShapeDtypeStruct((8, Bp), jnp.float32),
        grid=(num_tiles,),
        in_specs=[
            pl.BlockSpec((8, tb),   lambda i: (0, i)),   # x tile (streams)
            pl.BlockSpec((128, 8),  lambda i: (0, 0)),   # W1'|b1' (resident)
            pl.BlockSpec((64, 128), lambda i: (0, 0)),   # W2'     (resident)
            pl.BlockSpec((64, 1),   lambda i: (0, 0)),   # b2'     (resident)
            pl.BlockSpec((8, 64),   lambda i: (0, 0)),   # W3 pad  (resident)
            pl.BlockSpec((8, 1),    lambda i: (0, 0)),   # b3 pad  (resident)
        ],
        out_specs=pl.BlockSpec((8, tb), lambda i: (0, i)),
        compiler_params=pltpu.CompilerParams(
            # Independent batch tiles: shard across the 2 TCs on v7x;
            # harmless no-op on single-TC v5e/v6e.
            dimension_semantics=("parallel",),
        ),
    )(*args)

    # Layout plumbing back to PyTorch convention (B, 2); drop padded rows/cols.
    return out_t[:2, :B].T


# --------------------------------------------------------------------------
# Parameter construction (PyTorch-equivalent) + BN folding
# --------------------------------------------------------------------------
def init_torch_params(key):
    """Mirrors PyTorch layouts: Linear W (out, in), b (out,); BatchNorm1d
    gamma/beta/running_mean/running_var (n,). Uses non-trivial running stats
    so the BN fold is actually exercised by the correctness check."""
    ks = jax.random.split(key, 8)

    def linear(kw, kb, fan_in, fan_out):
        bound = 1.0 / jnp.sqrt(fan_in)
        w = jax.random.uniform(kw, (fan_out, fan_in), jnp.float32, -bound, bound)
        b = jax.random.uniform(kb, (fan_out,), jnp.float32, -bound, bound)
        return w, b

    def bn(k, n):
        km, kv = jax.random.split(k)
        gamma = jnp.ones((n,), jnp.float32)
        beta = jnp.zeros((n,), jnp.float32)
        mean = 0.1 * jax.random.normal(km, (n,), jnp.float32)
        var = jax.random.uniform(kv, (n,), jnp.float32, 0.5, 1.5)
        return gamma, beta, mean, var

    w1, b1 = linear(ks[0], ks[1], 7, 128)
    w2, b2 = linear(ks[2], ks[3], 128, 64)
    w3, b3 = linear(ks[4], ks[5], 64, 2)
    g1, be1, m1, v1 = bn(ks[6], 128)
    g2, be2, m2, v2 = bn(ks[7], 64)
    return dict(w1=w1, b1=b1, g1=g1, be1=be1, m1=m1, v1=v1,
                w2=w2, b2=b2, g2=g2, be2=be2, m2=m2, v2=v2,
                w3=w3, b3=b3)


def fold_params(p, eps=1e-5):
    """Fold eval-mode BatchNorm into the Linear weights/biases, fold the
    layer-1 bias into an extra weight column (paired with a constant-1 row),
    and zero-pad layer-3 to 8 output rows for aligned stores."""
    s1 = p["g1"] / jnp.sqrt(p["v1"] + eps)            # (128,)
    t1 = p["be1"] - p["m1"] * s1
    w1f = p["w1"] * s1[:, None]                       # (128, 7)
    b1f = p["b1"] * s1 + t1                           # (128,)
    w1_aug = jnp.concatenate([w1f, b1f[:, None]], axis=1)   # (128, 8)

    s2 = p["g2"] / jnp.sqrt(p["v2"] + eps)            # (64,)
    t2 = p["be2"] - p["m2"] * s2
    w2f = p["w2"] * s2[:, None]                       # (64, 128)
    b2f = (p["b2"] * s2 + t2)[:, None]                # (64, 1)

    w3_pad = jnp.zeros((8, 64), jnp.float32).at[:2, :].set(p["w3"])   # (8, 64)
    b3_pad = jnp.zeros((8, 1), jnp.float32).at[:2, 0].set(p["b3"])    # (8, 1)
    return (w1_aug, w2f, b2f, w3_pad, b3_pad)


def reference_forward(x, p, eps=1e-5):
    """Unfolded, batch-major reference identical to TitanicNN.eval()."""
    hp = jax.lax.Precision.HIGHEST
    h = jnp.dot(x, p["w1"].T, precision=hp) + p["b1"]
    h = (h - p["m1"]) / jnp.sqrt(p["v1"] + eps) * p["g1"] + p["be1"]
    h = jnp.maximum(h, 0.0)
    # dropout(p=0.3): identity in eval mode
    h = jnp.dot(h, p["w2"].T, precision=hp) + p["b2"]
    h = (h - p["m2"]) / jnp.sqrt(p["v2"] + eps) * p["g2"] + p["be2"]
    h = jnp.maximum(h, 0.0)
    return jnp.dot(h, p["w3"].T, precision=hp) + p["b3"]


# --------------------------------------------------------------------------
if __name__ == "__main__":
    key = jax.random.PRNGKey(0)
    kx, kp = jax.random.split(key)

    batch = 8
    x = jax.random.normal(kx, (batch, 7), jnp.float32)   # 7 Titanic features

    torch_params = init_torch_params(kp)
    folded = fold_params(torch_params)

    out = titanic_nn_forward(x, folded)
    out = jax.block_until_ready(out)

    ref = reference_forward(x, torch_params)
    assert out.shape == (batch, 2), out.shape
    assert jnp.allclose(out, ref, atol=1e-4, rtol=1e-4), (
        jnp.max(jnp.abs(out - ref)), out, ref)

    print("KERNEL_OK")
</pallas_src>

<mosaic_0001>
module attributes {stable_mosaic.version = 11 : i64} {
  func.func @titanic_mlp_kernel(%arg0: i32, %arg1: memref<8x128xf32, #tpu.memory_space<vmem>>, %arg2: memref<128x8xf32, #tpu.memory_space<vmem>>, %arg3: memref<64x128xf32, #tpu.memory_space<vmem>>, %arg4: memref<64x1xf32, #tpu.memory_space<vmem>>, %arg5: memref<8x64xf32, #tpu.memory_space<vmem>>, %arg6: memref<8x1xf32, #tpu.memory_space<vmem>>, %arg7: memref<8x128xf32, #tpu.memory_space<vmem>>) attributes {dimension_semantics = [#tpu.dimension_semantics<parallel>], iteration_bounds = array<i64: 1>, scalar_prefetch = 0 : i64, scratch_operands = 0 : i64, tpu.core_type = #tpu.core_type<tc>, window_params = [{transform_indices = @transform_0, window_bounds = array<i64: 8, 128>}, {pipeline_mode = #tpu.pipeline_mode<synchronous>, transform_indices = @transform_1, window_bounds = array<i64: 128, 8>}, {pipeline_mode = #tpu.pipeline_mode<synchronous>, transform_indices = @transform_2, window_bounds = array<i64: 64, 128>}, {pipeline_mode = #tpu.pipeline_mode<synchronous>, transform_indices = @transform_3, window_bounds = array<i64: 64, 1>}, {pipeline_mode = #tpu.pipeline_mode<synchronous>, transform_indices = @transform_4, window_bounds = array<i64: 8, 64>}, {pipeline_mode = #tpu.pipeline_mode<synchronous>, transform_indices = @transform_5, window_bounds = array<i64: 8, 1>}, {transform_indices = @transform_6, window_bounds = array<i64: 8, 128>}]} {
    %c0 = arith.constant 0 : index
    %c0_0 = arith.constant 0 : index
    %0 = vector.load %arg1[%c0, %c0_0] : memref<8x128xf32, #tpu.memory_space<vmem>>, vector<8x128xf32>
    %c0_1 = arith.constant 0 : index
    %c0_2 = arith.constant 0 : index
    %1 = vector.load %arg2[%c0_1, %c0_2] : memref<128x8xf32, #tpu.memory_space<vmem>>, vector<128x8xf32>
    %cst = arith.constant dense<0.000000e+00> : vector<128x128xf32>
    %2 = tpu.matmul %1, %0, %cst {dimension_numbers = #tpu.dot_dimension_numbers<[1], [0], [0], [1], [0, 0, 1, 1], [], []>} : vector<128x8xf32>, vector<8x128xf32>, vector<128x128xf32> -> vector<128x128xf32>
    %cst_3 = arith.constant 0.000000e+00 : f32
    %3 = vector.broadcast %cst_3 : f32 to vector<128x128xf32>
    %4 = arith.maximumf %2, %3 : vector<128x128xf32>
    %c0_4 = arith.constant 0 : index
    %c0_5 = arith.constant 0 : index
    %5 = vector.load %arg3[%c0_4, %c0_5] : memref<64x128xf32, #tpu.memory_space<vmem>>, vector<64x128xf32>
    %cst_6 = arith.constant dense<0.000000e+00> : vector<64x128xf32>
    %6 = tpu.matmul %5, %4, %cst_6 {dimension_numbers = #tpu.dot_dimension_numbers<[1], [0], [0], [1], [0, 0, 1, 1], [], []>} : vector<64x128xf32>, vector<128x128xf32>, vector<64x128xf32> -> vector<64x128xf32>
    %c0_7 = arith.constant 0 : index
    %c0_8 = arith.constant 0 : index
    %7 = vector.load %arg4[%c0_7, %c0_8] : memref<64x1xf32, #tpu.memory_space<vmem>>, vector<64x1xf32>
    %8 = vector.broadcast %7 : vector<64x1xf32> to vector<64x128xf32>
    %9 = arith.addf %6, %8 : vector<64x128xf32>
    %cst_9 = arith.constant 0.000000e+00 : f32
    %10 = vector.broadcast %cst_9 : f32 to vector<64x128xf32>
    %11 = arith.maximumf %9, %10 : vector<64x128xf32>
    %c0_10 = arith.constant 0 : index
    %c0_11 = arith.constant 0 : index
    %12 = vector.load %arg5[%c0_10, %c0_11] : memref<8x64xf32, #tpu.memory_space<vmem>>, vector<8x64xf32>
    %cst_12 = arith.constant dense<0.000000e+00> : vector<8x128xf32>
    %13 = tpu.matmul %12, %11, %cst_12 {dimension_numbers = #tpu.dot_dimension_numbers<[1], [0], [0], [1], [0, 0, 1, 1], [], []>} : vector<8x64xf32>, vector<64x128xf32>, vector<8x128xf32> -> vector<8x128xf32>
    %c0_13 = arith.constant 0 : index
    %c0_14 = arith.constant 0 : index
    %14 = vector.load %arg6[%c0_13, %c0_14] : memref<8x1xf32, #tpu.memory_space<vmem>>, vector<8x1xf32>
    %15 = vector.broadcast %14 : vector<8x1xf32> to vector<8x128xf32>
    %16 = arith.addf %13, %15 : vector<8x128xf32>
    %c0_15 = arith.constant 0 : index
    %c0_16 = arith.constant 0 : index
    %17 = vector.load %arg7[%c0_15, %c0_16] : memref<8x128xf32, #tpu.memory_space<vmem>>, vector<8x128xf32>
    tpu.vector_store %arg7[%c0_15, %c0_16], %16 {strides = array<i32>} : memref<8x128xf32, #tpu.memory_space<vmem>>, vector<8x128xf32>,
    return
  }
  func.func @transform_0(%arg0: i32) -> (i32, i32) {
    %c0_i32 = arith.constant 0 : i32
    %c0_i32_0 = arith.constant 0 : i32
    return %c0_i32, %arg0 : i32, i32
  }
  func.func @transform_1(%arg0: i32) -> (i32, i32) {
    %c0_i32 = arith.constant 0 : i32
    %c0_i32_0 = arith.constant 0 : i32
    %c0_i32_1 = arith.constant 0 : i32
    return %c0_i32, %c0_i32_0 : i32, i32
  }
  func.func @transform_2(%arg0: i32) -> (i32, i32) {
    %c0_i32 = arith.constant 0 : i32
    %c0_i32_0 = arith.constant 0 : i32
    %c0_i32_1 = arith.constant 0 : i32
    return %c0_i32, %c0_i32_0 : i32, i32
  }
  func.func @transform_3(%arg0: i32) -> (i32, i32) {
    %c0_i32 = arith.constant 0 : i32
    %c0_i32_0 = arith.constant 0 : i32
    %c0_i32_1 = arith.constant 0 : i32
    return %c0_i32, %c0_i32_0 : i32, i32
  }
  func.func @transform_4(%arg0: i32) -> (i32, i32) {
    %c0_i32 = arith.constant 0 : i32
    %c0_i32_0 = arith.constant 0 : i32
    %c0_i32_1 = arith.constant 0 : i32
    return %c0_i32, %c0_i32_0 : i32, i32
  }
  func.func @transform_5(%arg0: i32) -> (i32, i32) {
    %c0_i32 = arith.constant 0 : i32
    %c0_i32_0 = arith.constant 0 : i32
    %c0_i32_1 = arith.constant 0 : i32
    return %c0_i32, %c0_i32_0 : i32, i32
  }
  func.func @transform_6(%arg0: i32) -> (i32, i32) {
    %c0_i32 = arith.constant 0 : i32
    %c0_i32_0 = arith.constant 0 : i32
    return %c0_i32, %arg0 : i32, i32
  }
}

</mosaic_0001>

<bundles_post_ra>
// kernel: tpu_custom_call.1
= control target key start
LH: loop header
LB: loop body
LE: loop exit
PB: predicated region body
PF: predicated region fallthrough
CT: control target
= control target key end

     0   :  { %vm41_vm0 = vcmask 64512   ;;  %s866_s0 = inlined_call_operand.vmem [shape: f32[8,128], index: 0, kind: input, shape index: {}]   ;;  %s867_s1 = inlined_call_operand.vmem [shape: f32[128,8], index: 1, kind: input, shape index: {}]   ;;  %s868_s2 = inlined_call_operand.vmem [shape: f32[64,128], index: 2, kind: input, shape index: {}]   ;;  %s869_s3 = inlined_call_operand.vmem [shape: f32[64,1], index: 3, kind: input, shape index: {}]   ;;  %s870_s4 = inlined_call_operand.vmem [shape: f32[8,64], index: 4, kind: input, shape index: {}]   ;;  %s871_s5 = inlined_call_operand.vmem [shape: f32[8,1], index: 5, kind: input, shape index: {}]   ;;  %s872_s6 = inlined_call_operand.hbm [shape: f32[8,128], index: 6, kind: output, shape index: {}]  }
   0x1   :  { %v24_v0 = vld [vmem:[%s866_s0] sm:$0xff]  ;;  %v26_v2 = vld [vmem:[%s867_s1 + $0x8] sm:$0xff]  ;;  %v27_v3 = vld [vmem:[%s867_s1 + $0x10] sm:$0xff] }
   0x2   :  { %v25_v1 = vld [vmem:[%s867_s1] sm:$0xff]  ;;  %583 = vmatprep.subr.mxu0 %v24_v0  ;;  %v28_v4 = vld [vmem:[%s867_s1 + $0x18] sm:$0xff] }
   0x3   :  { %585 = vmatprep.mubr.msk.f32.mxu0 %vm41_vm0, %v25_v1  ;;  %584 = vmatpush3.msra.mxu0 %v24_v0  ;;  %v29_v5 = vld [vmem:[%s867_s1 + $0x20] sm:$0xff] }
   0x4   :  { %586 = vmatmul.mubr.msk.f32.vlgmr.msra.gmra.mxu0 %vm41_vm0, %v26_v2 }
   0x5   :  { %588 = vmatprep.mubr.msk.f32.mxu0 %vm41_vm0, %v27_v3 }
   0x6   :  { %11 = vsyncpa [#allocation3], 0  ;;  %v30_v6 = vld [vmem:[%s867_s1 + $0x28] sm:$0xff]  ;;  %v31_v7 = vld [vmem:[%s867_s1 + $0x30] sm:$0xff]  ;;  %v700_v20 = vmov 0   ;;  %v701_v3 = vmov 0.0  }
   0x7   :  { %v32_v8 = vld [vmem:[%s867_s1 + $0x38] sm:$0xff]  ;;  %v33_v9 = vld [vmem:[%s867_s1 + $0x40] sm:$0xff]  ;;  %v34_v10 = vld [vmem:[%s867_s1 + $0x48] sm:$0xff]  ;;  %676 = vset.pattern.permute.xlu0 %v700_v20  ;;  %677 = vset.pattern.permute.xlu1 %v700_v20  ;;  %vm702_vm1 = vmmov 0   ;;  %vm427_vm2 = vcmask 523264   ;;  %s703_s11 = smov [#allocation2]  }
   0x8   :  { %589 = vmatmul.mubr.msk.f32.gmra.mxu0 %vm41_vm0, %v28_v4  ;;  %v35_v11 = vld [vmem:[%s867_s1 + $0x50] sm:$0xff]  ;;  %v36_v12 = vld [vmem:[%s867_s1 + $0x58] sm:$0xff]  ;;  %v37_v13 = vld [vmem:[%s867_s1 + $0x60] sm:$0xff]  ;;  %653 = vmatprep.subr.mxu0 %v701_v3  ;;  %s508_s12 = sshll.u32 %s703_s11, 4  ;;  %s509_s12 = int_to_ptr.vmem [resolvable:$true] %s508_s12 }
   0x9   :  { %591 = vmatprep.mubr.msk.f32.mxu0 %vm41_vm0, %v29_v5  ;;  %v38_v14 = vld [vmem:[%s867_s1 + $0x68] sm:$0xff]  ;;  %v39_v15 = vld [vmem:[%s867_s1 + $0x70] sm:$0xff]  ;;  %v40_v16 = vld [vmem:[%s867_s1 + $0x78] sm:$0xff]  ;;  %s678_s13 = scalar_lea.vmem %s509_s12, 128  ;;  %p683_p1 = scmp.lt.s32.totalorder %s509_s12, %s509_s12 }
   0xa   :  { %v251_v17 = vld [vmem:[%s868_s2] sm:$0xff]  ;;  %v266_v18 = vld [vmem:[%s869_s3 + $0x38] sm:$0xff]  ;;  %v264_v19 = vld [vmem:[%s869_s3 + $0x28] sm:$0xff]  ;;  %p679_p0 = scmp.ne.s32.totalorder %s509_s12, %s678_s13  ;;  %p684_p2 = scmp.lt.s32.totalorder %s678_s13, %s678_s13 }
   0xb   :  { %641 = vmatprep.mubr.f32.mxu1 %v251_v17  ;;  %304 = vperm.xlu0 %676, %v266_v18   ;;  %v265_v21 = vld [vmem:[%s869_s3 + $0x30] sm:$0xff]  ;;  %v263_v22 = vld [vmem:[%s869_s3 + $0x20] sm:$0xff]  ;;  %v262_v23 = vld [vmem:[%s869_s3 + $0x18] sm:$0xff] }
   0xc   :  { %592 = vmatmul.mubr.msk.f32.gmra.mxu0 %vm41_vm0, %v30_v6  ;;  %294 = vperm.xlu1 %677, %v264_v19   ;;  %v261_v24 = vld [vmem:[%s869_s3 + $0x10] sm:$0xff]  ;;  %v260_v25 = vld [vmem:[%s869_s3 + $0x8] sm:$0xff]  ;;  %v259_v26 = vld [vmem:[%s869_s3] sm:$0xff]  ;;  %p685_p3 = por %p684_p2, %p683_p1 }
   0xd   :  { %594 = vmatprep.mubr.msk.f32.mxu0 %vm41_vm0, %v31_v7  ;;  %v421_v27 = vld [vmem:[%s871_s5] sm:$0xff]  ;;  %v252_v60 = vld [vmem:[%s868_s2 + $0x8] sm:$0xff]  ;;  %v253_v61 = vld [vmem:[%s868_s2 + $0x10] sm:$0xff] }
   0xe   :  { %v254_v62 = vld [vmem:[%s868_s2 + $0x18] sm:$0xff]  ;;  %v255_v63 = vld [vmem:[%s868_s2 + $0x20] sm:$0xff]  ;;  %v256_v0 = vld [vmem:[%s868_s2 + $0x28] sm:$0xff]  ;;  %p686_p4 = pnand %p685_p3, %p679_p0 }
   0xf   :  { %299 = vperm.xlu0 %676, %v265_v21   ;;  %v257_v1 = vld [vmem:[%s868_s2 + $0x30] sm:$0xff]  ;;  %v258_v2 = vld [vmem:[%s868_s2 + $0x38] sm:$0xff] }
  0x10   :  { %595 = vmatmul.mubr.msk.f32.gmra.mxu0 %vm41_vm0, %v32_v8  ;;  %289 = vperm.xlu1 %677, %v263_v22  }
  0x11   :  { %597 = vmatprep.mubr.msk.f32.mxu0 %vm41_vm0, %v33_v9 }
  0x13   :  { %284 = vperm.xlu0 %676, %v262_v23  }
  0x14   :  { %598 = vmatmul.mubr.msk.f32.gmra.mxu0 %vm41_vm0, %v34_v10  ;;  %279 = vperm.xlu1 %677, %v261_v24  }
  0x15   :  { %600 = vmatprep.mubr.msk.f32.mxu0 %vm41_vm0, %v35_v11 }
  0x17   :  { %274 = vperm.xlu0 %676, %v260_v25  }
  0x18   :  { %601 = vmatmul.mubr.msk.f32.gmra.mxu0 %vm41_vm0, %v36_v12  ;;  %269 = vperm.xlu1 %677, %v259_v26  }
  0x19   :  { %603 = vmatprep.mubr.msk.f32.mxu0 %vm41_vm0, %v37_v13 }
  0x1b   :  { %424 = vperm.xlu0 %676, %v421_v27  }
  0x1c   :  { %604 = vmatmul.mubr.msk.f32.gmra.mxu0 %vm41_vm0, %v38_v14 }
  0x1d   :  { %606 = vmatprep.mubr.msk.f32.mxu0 %vm41_vm0, %v39_v15 }
  0x20   :  { %607 = vmatmul.mubr.msk.f32.gmra.mxu0 %vm41_vm0, %v40_v16 }
  0x21   :  { %669 = vmatprep.mubr.msk.f32.mxu0 %vm702_vm1, %v701_v3 }
  0x86   :  { %v305_v5 = vpop.permute.xlu0 %304 }
  0x87   :  { %v295_v7 = vpop.permute.xlu1 %294 }
  0x8a   :  { %v300_v10 = vpop.permute.xlu0 %299 }
  0x8b   :  { %v290_v12 = vpop.permute.xlu1 %289 }
  0x8e   :  { %v285_v16 = vpop.permute.xlu0 %284 }
  0x8f   :  { %v280_v21 = vpop.permute.xlu1 %279 }
  0x92   :  { %v275_v26 = vpop.permute.xlu0 %274 }
  0xc4   :  { %v587_v28 = vpop.f32.mrf.mxu0 }
  0xc5   :  { %v236_v58 = vmax.f32 %v587_v28, 0.0 }
  0xc6   :  { %v836_v29 = vpop.f32.mrf.mxu0 }
  0xc7   :  { %v235_v59 = vmax.f32 %v836_v29, 0.0  ;;  %v270_v29 = vpop.permute.xlu1 %269 }
  0xc8   :  { %v590_v30 = vpop.f32.mrf.mxu0 }
  0xc9   :  { %v238_v56 = vmax.f32 %v590_v30, 0.0 }
  0xca   :  { %v166_v31 = vpop.f32.mrf.mxu0 }
  0xcb   :  { %v237_v57 = vmax.f32 %v166_v31, 0.0 }
  0xcc   :  { %v593_v32 = vpop.f32.mrf.mxu0 }
  0xcd   :  { %v240_v54 = vmax.f32 %v593_v32, 0.0 }
  0xce   :  { %v176_v33 = vpop.f32.mrf.mxu0 }
  0xcf   :  { %v239_v55 = vmax.f32 %v176_v33, 0.0 }
  0xd0   :  { %v596_v34 = vpop.f32.mrf.mxu0 }
  0xd1   :  { %v242_v52 = vmax.f32 %v596_v34, 0.0 }
  0xd2   :  { %v186_v35 = vpop.f32.mrf.mxu0 }
  0xd3   :  { %v241_v53 = vmax.f32 %v186_v35, 0.0 }
  0xd4   :  { %v599_v36 = vpop.f32.mrf.mxu0 }
  0xd5   :  { %v244_v50 = vmax.f32 %v599_v36, 0.0  ;;  %v420_v36 = vld [vmem:[%s870_s4] sm:$0xff] }
  0xd6   :  { %v196_v37 = vpop.f32.mrf.mxu0 }
  0xd7   :  { %v243_v51 = vmax.f32 %v196_v37, 0.0  ;;  %v425_v37 = vpop.permute.xlu0 %424 }
  0xd8   :  { %v602_v38 = vpop.f32.mrf.mxu0 }
  0xd9   :  { %v246_v48 = vmax.f32 %v602_v38, 0.0 }
  0xda   :  { %v206_v39 = vpop.f32.mrf.mxu0 }
  0xdb   :  { %v245_v49 = vmax.f32 %v206_v39, 0.0 }
  0xdc   :  { %v605_v40 = vpop.f32.mrf.mxu0 }
  0xdd   :  { %v248_v46 = vmax.f32 %v605_v40, 0.0 }
  0xde   :  { %v216_v41 = vpop.f32.mrf.mxu0 }
  0xdf   :  { %v247_v47 = vmax.f32 %v216_v41, 0.0 }
  0xe0   :  { %v608_v42 = vpop.f32.mrf.mxu0 }
  0xe1   :  { %v250_v43 = vmax.f32 %v608_v42, 0.0 }
  0xe2   :  { %v226_v44 = vpop.f32.mrf.mxu0 }
  0xe3   :  { %v249_v45 = vmax.f32 %v226_v44, 0.0  ;;  %609 = vmatprep.subr.mxu1 %v250_v43 }
  0xe4   :  { %610 = vmatpush3.msra.mxu1 %v250_v43 }
  0xe5   :  { %611 = vmatprep.subr.mxu1 %v249_v45 }
  0xe6   :  { %612 = vmatpush3.msra.mxu1 %v249_v45 }
  0xe7   :  { %613 = vmatprep.subr.mxu1 %v248_v46 }
  0xe8   :  { %614 = vmatpush3.msra.mxu1 %v248_v46 }
  0xe9   :  { %615 = vmatprep.subr.mxu1 %v247_v47 }
  0xea   :  { %616 = vmatpush3.msra.mxu1 %v247_v47 }
  0xeb   :  { %617 = vmatprep.subr.mxu1 %v246_v48 }
  0xec   :  { %618 = vmatpush3.msra.mxu1 %v246_v48 }
  0xed   :  { %619 = vmatprep.subr.mxu1 %v245_v49 }
  0xee   :  { %620 = vmatpush3.msra.mxu1 %v245_v49 }
  0xef   :  { %621 = vmatprep.subr.mxu1 %v244_v50 }
  0xf0   :  { %622 = vmatpush3.msra.mxu1 %v244_v50 }
  0xf1   :  { %623 = vmatprep.subr.mxu1 %v243_v51 }
  0xf2   :  { %624 = vmatpush3.msra.mxu1 %v243_v51 }
  0xf3   :  { %625 = vmatprep.subr.mxu1 %v242_v52 }
  0xf4   :  { %626 = vmatpush3.msra.mxu1 %v242_v52 }
  0xf5   :  { %627 = vmatprep.subr.mxu1 %v241_v53 }
  0xf6   :  { %628 = vmatpush3.msra.mxu1 %v241_v53 }
  0xf7   :  { %629 = vmatprep.subr.mxu1 %v240_v54 }
  0xf8   :  { %630 = vmatpush3.msra.mxu1 %v240_v54 }
  0xf9   :  { %631 = vmatprep.subr.mxu1 %v239_v55 }
  0xfa   :  { %632 = vmatpush3.msra.mxu1 %v239_v55 }
  0xfb   :  { %633 = vmatprep.subr.mxu1 %v238_v56 }
  0xfc   :  { %634 = vmatpush3.msra.mxu1 %v238_v56 }
  0xfd   :  { %635 = vmatprep.subr.mxu1 %v237_v57 }
  0xfe   :  { %636 = vmatpush3.msra.mxu1 %v237_v57 }
  0xff   :  { %637 = vmatprep.subr.mxu1 %v236_v58 }
 0x100   :  { %638 = vmatpush3.msra.mxu1 %v236_v58 }
 0x101   :  { %639 = vmatprep.subr.mxu1 %v235_v59 }
 0x102   :  { %640 = vmatpush3.msra.mxu1 %v235_v59 }
 0x103   :  { %642 = vmatmul.mubr.f32.vlgmr.msra.gmra.mxu1 %v252_v60 }
 0x104   :  { %644 = vmatprep.mubr.f32.mxu1 %v253_v61 }
 0x107   :  { %645 = vmatmul.mubr.f32.gmra.mxu1 %v254_v62 }
 0x108   :  { %647 = vmatprep.mubr.f32.mxu1 %v255_v63 }
 0x10b   :  { %648 = vmatmul.mubr.f32.gmra.mxu1 %v256_v0 }
 0x10c   :  { %650 = vmatprep.mubr.f32.mxu1 %v257_v1 }
 0x10f   :  { %651 = vmatmul.mubr.f32.gmra.mxu1 %v258_v2 }
 0x1c3   :  { %v643_v4 = vpop.f32.mrf.mxu1 }
 0x1c4   :  { %v379_v30 = vadd.f32 %v643_v4, %v275_v26 }
 0x1c5   :  { %v373_v6 = vpop.f32.mrf.mxu1 }
 0x1c6   :  { %v374_v32 = vadd.f32 %v373_v6, %v270_v29  ;;  %v413_v34 = vmax.f32 %v379_v30, 0.0 }
 0x1c7   :  { %v646_v8 = vpop.f32.mrf.mxu1 }
 0x1c8   :  { %v389_v24 = vadd.f32 %v646_v8, %v285_v16  ;;  %v412_v35 = vmax.f32 %v374_v32, 0.0 }
 0x1c9   :  { %v383_v9 = vpop.f32.mrf.mxu1 }
 0x1ca   :  { %v384_v27 = vadd.f32 %v383_v9, %v280_v21  ;;  %v415_v31 = vmax.f32 %v389_v24, 0.0 }
 0x1cb   :  { %v649_v11 = vpop.f32.mrf.mxu1 }
 0x1cc   :  { %v399_v18 = vadd.f32 %v649_v11, %v295_v7  ;;  %v414_v33 = vmax.f32 %v384_v27, 0.0 }
 0x1cd   :  { %v393_v13 = vpop.f32.mrf.mxu1 }
 0x1ce   :  { %v394_v22 = vadd.f32 %v393_v13, %v290_v12  ;;  %v417_v25 = vmax.f32 %v399_v18, 0.0 }
 0x1cf   :  { %v652_v14 = vpop.f32.mrf.mxu1 }
 0x1d0   :  { %v409_v15 = vadd.f32 %v652_v14, %v305_v5  ;;  %v416_v28 = vmax.f32 %v394_v22, 0.0 }
 0x1d1   :  { %v403_v17 = vpop.f32.mrf.mxu1 }
 0x1d2   :  { %v419_v19 = vmax.f32 %v409_v15, 0.0  ;;  %v404_v20 = vadd.f32 %v403_v17, %v300_v10 }
 0x1d4   :  { %v418_v23 = vmax.f32 %v404_v20, 0.0  ;;  %654 = vmatpush3.msra.mxu0 %v419_v19 }
 0x1d5   :  { %655 = vmatprep.subr.mxu0 %v701_v3 }
 0x1d6   :  { %656 = vmatpush3.msra.mxu0 %v418_v23 }
 0x1d7   :  { %657 = vmatprep.subr.mxu0 %v701_v3 }
 0x1d8   :  { %658 = vmatpush3.msra.mxu0 %v417_v25 }
 0x1d9   :  { %659 = vmatprep.subr.mxu0 %v701_v3 }
 0x1da   :  { %660 = vmatpush3.msra.mxu0 %v416_v28 }
 0x1db   :  { %661 = vmatprep.subr.mxu0 %v701_v3 }
 0x1dc   :  { %662 = vmatpush3.msra.mxu0 %v415_v31 }
 0x1dd   :  { %663 = vmatprep.subr.mxu0 %v701_v3 }
 0x1de   :  { %664 = vmatpush3.msra.mxu0 %v414_v33 }
 0x1df   :  { %665 = vmatprep.subr.mxu0 %v701_v3 }
 0x1e0   :  { %666 = vmatpush3.msra.mxu0 %v413_v34 }
 0x1e1   :  { %667 = vmatprep.subr.mxu0 %v701_v3 }
 0x1e2   :  { %668 = vmatpush3.msra.mxu0 %v412_v35 }
 0x1e3   :  { %670 = vmatmul.mubr.msk.f32.vlgmr.msra.gmra.mxu0 %vm427_vm2, %v420_v36 }
 0x2a3   :  { %v497_v38 = vpop.f32.mrf.mxu0 }
 0x2a4   :  { %v498_v39 = vadd.f32 %v497_v38, %v425_v37 }
 0x2a5   :  { %v671_v40 = vpop.f32.mrf.mxu0 }
 0x2a6   :  { %501 = vst [vmem:[#allocation2] sm:$0xff] %v498_v39 }
 0x2a7   :  { %689 = shalt.err (!%p686_p4)
}
 0x2a8   :  { %511 = dma.vmem_to_hbm [thread:$0]  %s509_s12, 128, %s872_s6, [#allocation3]  }
 0x2a9   :  { %698 = dma.done.wait [#allocation3], 128  }
 0x2aa   :  { %699 = vsyncadd [#allocation3], 4294967168 }
 0x2ab   :  { %515 = vsyncpa [#allocation3], 1 }

</bundles_post_ra>
